<compile_context>
chip_gen: v7x
topology: tpu7x:2x2x1
jax: 0.10.0
libtpu: 0.0.40
codegen_flags: <defaults>
</compile_context>

<pallas_src>
import jax
import jax.numpy as jnp
from jax.experimental import pallas as pl
from jax.experimental.pallas import tpu as pltpu

LN_EPS = 1e-5  # PyTorch nn.LayerNorm default
PAD = 1        # nn.Conv1d(..., padding=1) in the module


def _predictor_kernel(x_ref, w1_ref, b1_ref, g1_ref, be1_ref,
                      w2_ref, b2_ref, g2_ref, be2_ref,
                      wl_ref, bl_ref, o_ref):
    # x_ref: (1, T, E) block for one batch element.
    x = x_ref[0]                       # (T, E) f32
    T = x.shape[0]
    K = w1_ref.shape[0]
    F = w1_ref.shape[2]

    # Row-index map used to zero conv taps that read past the sequence ends.
    row = jax.lax.broadcasted_iota(jnp.int32, (T, F), 0)

    def conv1d(h, w_ref, b_ref):
        # 'same' conv (padding=1): y[t] = b + sum_k h[t + k - PAD] @ W_k, zero outside [0,T).
        # Each tap is an unshifted (T,Cin)@(Cin,Cout) bf16 MXU matmul; the row shift is
        # applied to the output via an XLU roll + boundary mask (wrapped rows zeroed).
        hb = h.astype(jnp.bfloat16)
        acc = jnp.zeros((T, F), jnp.float32)
        for k in range(K):                                   # static, unrolled taps
            z = jnp.dot(hb, w_ref[k], preferred_element_type=jnp.float32)  # (T, F) f32
            d = k - PAD                                      # source-row offset
            if d == 0:
                acc = acc + z
            else:
                zr = pltpu.roll(z, shift=(-d) % T, axis=0)   # zr[t] = z[t + d] (wrapped)
                valid = jnp.logical_and(row + d >= 0, row + d < T)
                acc = acc + jnp.where(valid, zr, 0.0)
        return acc + b_ref[...]                              # (1, F) bias broadcasts

    def layernorm(h, g_ref, b_ref):
        # One-pass stats: mean and mean-of-squares together; rsqrt goes to the EUP.
        mean = jnp.mean(h, axis=-1, keepdims=True)
        msq = jnp.mean(h * h, axis=-1, keepdims=True)
        var = msq - mean * mean
        hn = (h - mean) * jax.lax.rsqrt(var + LN_EPS)
        return hn * g_ref[...] + b_ref[...]

    # Block 1: Conv1d -> ReLU -> LayerNorm -> (Dropout = identity in eval)
    h = layernorm(jnp.maximum(conv1d(x, w1_ref, b1_ref), 0.0), g1_ref, be1_ref)
    # TODO(synk): nn.Dropout skipped — inference semantics (identity).

    # Block 2: Conv1d -> ReLU -> LayerNorm -> (Dropout = identity)
    h = layernorm(jnp.maximum(conv1d(h, w2_ref, b2_ref), 0.0), g2_ref, be2_ref)

    # Linear(F -> 1) + ReLU, produced directly as a lane-dense (1, T) row:
    # contract (1,F) with (T,F) over F (i.e. wl @ h.T) — keeps wl lane-major and
    # avoids width-1 masked stores on the output path.
    lin = jax.lax.dot_general(wl_ref[...], h, (((1,), (1,)), ((), ())),
                              preferred_element_type=jnp.float32)      # (1, T)
    out = jnp.maximum(lin + bl_ref[0], 0.0)
    o_ref[...] = out[None].astype(o_ref.dtype)                          # (1, 1, T)


def universal_predictor(x, params):
    """x: (B, T, E) float32. Returns (B, T) float32 (PyTorch forward's squeeze(-1))."""
    (w1, b1, g1, be1, w2, b2, g2, be2, wl, bl) = params
    B, T, E = x.shape
    K, _, F = w1.shape

    full3 = lambda b: (0, 0, 0)
    full2 = lambda b: (0, 0)

    out = pl.pallas_call(
        _predictor_kernel,
        out_shape=jax.ShapeDtypeStruct((B, 1, T), jnp.float32),
        grid_spec=pltpu.PrefetchScalarGridSpec(
            num_scalar_prefetch=0,
            grid=(B,),
            in_specs=[
                pl.BlockSpec((1, T, E), lambda b: (b, 0, 0)),   # x
                pl.BlockSpec((K, E, F), full3),                 # conv1 weight (K,Cin,Cout) bf16
                pl.BlockSpec((1, F), full2),                    # conv1 bias
                pl.BlockSpec((1, F), full2),                    # ln1 gamma
                pl.BlockSpec((1, F), full2),                    # ln1 beta
                pl.BlockSpec((K, F, F), full3),                 # conv2 weight bf16
                pl.BlockSpec((1, F), full2),                    # conv2 bias
                pl.BlockSpec((1, F), full2),                    # ln2 gamma
                pl.BlockSpec((1, F), full2),                    # ln2 beta
                pl.BlockSpec((1, F), full2),                    # linear weight (lane-dense)
                pl.BlockSpec(memory_space=pltpu.MemorySpace.SMEM),  # linear bias (1,) scalar
            ],
            out_specs=pl.BlockSpec((1, 1, T), lambda b: (b, 0, 0)),
        ),
        compiler_params=pltpu.CompilerParams(
            dimension_semantics=("parallel",)),                 # per-batch work is independent
    )(x, w1, b1, g1, be1, w2, b2, g2, be2, wl, bl)
    return out[:, 0, :]                                         # (B, T)


def make_params(key, encoder_dim, filter_size, kernel_size):
    ks = jax.random.split(key, 6)
    scale = 0.1
    # Conv weights stored as (K, Cin, Cout) == pytorch_weight.transpose(2, 1, 0), kept bf16 in HBM.
    w1 = (scale * jax.random.normal(ks[0], (kernel_size, encoder_dim, filter_size),
                                    jnp.float32)).astype(jnp.bfloat16)
    b1 = scale * jax.random.normal(ks[1], (1, filter_size), jnp.float32)
    w2 = (scale * jax.random.normal(ks[2], (kernel_size, filter_size, filter_size),
                                    jnp.float32)).astype(jnp.bfloat16)
    b2 = scale * jax.random.normal(ks[3], (1, filter_size), jnp.float32)
    g1 = jnp.ones((1, filter_size), jnp.float32)
    be1 = jnp.zeros((1, filter_size), jnp.float32)
    g2 = jnp.ones((1, filter_size), jnp.float32)
    be2 = jnp.zeros((1, filter_size), jnp.float32)
    wl = scale * jax.random.normal(ks[4], (1, filter_size), jnp.float32)   # PyTorch Linear weight (1, F)
    bl = scale * jax.random.normal(ks[5], (1,), jnp.float32)
    return (w1, b1, g1, be1, w2, b2, g2, be2, wl, bl)


def reference_forward(x, params):
    """Pure-JAX f32 reference mirroring the PyTorch forward (eval mode)."""
    (w1, b1, g1, be1, w2, b2, g2, be2, wl, bl) = params
    T = x.shape[1]
    K = w1.shape[0]
    w1f = w1.astype(jnp.float32)
    w2f = w2.astype(jnp.float32)

    def conv(h, w, b):
        hp = jnp.pad(h, ((0, 0), (1, 1), (0, 0)))
        return sum(jnp.einsum("btc,cf->btf", hp[:, k:k + T], w[k]) for k in range(K)) + b

    def ln(h, g, b):
        m = h.mean(-1, keepdims=True)
        v = ((h - m) ** 2).mean(-1, keepdims=True)
        return (h - m) / jnp.sqrt(v + LN_EPS) * g + b

    h = ln(jnp.maximum(conv(x, w1f, b1), 0.0), g1, be1)
    h = ln(jnp.maximum(conv(h, w2f, b2), 0.0), g2, be2)
    out = jnp.maximum(h @ wl[0] + bl[0], 0.0)
    return out


if __name__ == "__main__":
    B, T, E = 2, 8, 32          # batch, sequence length, encoder_dim
    F, K = 32, 3                # duration_predictor_filter_size, kernel_size (padding=1)

    key = jax.random.PRNGKey(0)
    kx, kp = jax.random.split(key)
    x = jax.random.normal(kx, (B, T, E), jnp.float32)
    params = make_params(kp, E, F, K)

    out = jax.block_until_ready(universal_predictor(x, params))
    ref = jax.block_until_ready(reference_forward(x, params))

    assert out.shape == (B, T), out.shape
    # bf16 conv matmuls vs. f32 reference -> relaxed tolerance (stats/LN stay f32).
    err = float(jnp.max(jnp.abs(out - ref)))
    assert jnp.allclose(out, ref, atol=3e-2, rtol=3e-2), err
    print("KERNEL_OK")
</pallas_src>

<mosaic_0001>
module attributes {stable_mosaic.version = 11 : i64} {
  func.func @_predictor_kernel(%arg0: i32, %arg1: memref<1x8x32xf32, #tpu.memory_space<vmem>>, %arg2: memref<3x32x32xbf16, #tpu.memory_space<vmem>>, %arg3: memref<1x32xf32, #tpu.memory_space<vmem>>, %arg4: memref<1x32xf32, #tpu.memory_space<vmem>>, %arg5: memref<1x32xf32, #tpu.memory_space<vmem>>, %arg6: memref<3x32x32xbf16, #tpu.memory_space<vmem>>, %arg7: memref<1x32xf32, #tpu.memory_space<vmem>>, %arg8: memref<1x32xf32, #tpu.memory_space<vmem>>, %arg9: memref<1x32xf32, #tpu.memory_space<vmem>>, %arg10: memref<1x32xf32, #tpu.memory_space<vmem>>, %arg11: memref<1xf32, #tpu.memory_space<smem>>, %arg12: memref<1x1x8xf32, #tpu.memory_space<vmem>>) attributes {dimension_semantics = [#tpu.dimension_semantics<parallel>], iteration_bounds = array<i64: 2>, scalar_prefetch = 0 : i64, scratch_operands = 0 : i64, tpu.core_type = #tpu.core_type<tc>, window_params = [{transform_indices = @transform_0, window_bounds = array<i64: 1, 8, 32>}, {pipeline_mode = #tpu.pipeline_mode<synchronous>, transform_indices = @transform_1, window_bounds = array<i64: 3, 32, 32>}, {pipeline_mode = #tpu.pipeline_mode<synchronous>, transform_indices = @transform_2, window_bounds = array<i64: 1, 32>}, {pipeline_mode = #tpu.pipeline_mode<synchronous>, transform_indices = @transform_3, window_bounds = array<i64: 1, 32>}, {pipeline_mode = #tpu.pipeline_mode<synchronous>, transform_indices = @transform_4, window_bounds = array<i64: 1, 32>}, {pipeline_mode = #tpu.pipeline_mode<synchronous>, transform_indices = @transform_5, window_bounds = array<i64: 3, 32, 32>}, {pipeline_mode = #tpu.pipeline_mode<synchronous>, transform_indices = @transform_6, window_bounds = array<i64: 1, 32>}, {pipeline_mode = #tpu.pipeline_mode<synchronous>, transform_indices = @transform_7, window_bounds = array<i64: 1, 32>}, {pipeline_mode = #tpu.pipeline_mode<synchronous>, transform_indices = @transform_8, window_bounds = array<i64: 1, 32>}, {pipeline_mode = #tpu.pipeline_mode<synchronous>, transform_indices = @transform_9, window_bounds = array<i64: 1, 32>}, {transform_indices = @transform_10, window_bounds = array<i64: 1>}, {transform_indices = @transform_11, window_bounds = array<i64: 1, 1, 8>}]} {
    %c0 = arith.constant 0 : index
    %c0_0 = arith.constant 0 : index
    %c0_1 = arith.constant 0 : index
    %0 = vector.load %arg1[%c0, %c0_0, %c0_1] : memref<1x8x32xf32, #tpu.memory_space<vmem>>, vector<1x8x32xf32>
    %1 = vector.shape_cast %0 : vector<1x8x32xf32> to vector<8x32xf32>
    %2 = tpu.iota {dimensions = array<i32: 0>} : vector<8x32xi32>
    %3 = arith.truncf %1 : vector<8x32xf32> to vector<8x32xbf16>
    %cst = arith.constant 0.000000e+00 : f32
    %4 = vector.broadcast %cst : f32 to vector<8x32xf32>
    %c0_2 = arith.constant 0 : index
    %c0_3 = arith.constant 0 : index
    %c0_4 = arith.constant 0 : index
    %5 = vector.load %arg2[%c0_2, %c0_3, %c0_4] : memref<3x32x32xbf16, #tpu.memory_space<vmem>>, vector<1x32x32xbf16>
    %6 = vector.shape_cast %5 : vector<1x32x32xbf16> to vector<32x32xbf16>
    %cst_5 = arith.constant dense<0.000000e+00> : vector<8x32xf32>
    %7 = tpu.matmul %3, %6, %cst_5 {dimension_numbers = #tpu.dot_dimension_numbers<[1], [0], [0], [1], [0, 0, 1, 1], [], []>} : vector<8x32xbf16>, vector<32x32xbf16>, vector<8x32xf32> -> vector<8x32xf32>
    %c1_i32 = arith.constant 1 : i32
    %8 = tpu.dynamic_rotate %7 by %c1_i32 dim 0 : vector<8x32xf32>, i32 -> vector<8x32xf32>
    %c-1_i32 = arith.constant -1 : i32
    %9 = vector.broadcast %c-1_i32 : i32 to vector<8x32xi32>
    %10 = arith.addi %2, %9 : vector<8x32xi32>
    %c0_i32 = arith.constant 0 : i32
    %11 = vector.broadcast %c0_i32 : i32 to vector<8x32xi32>
    %12 = arith.cmpi sge, %10, %11 : vector<8x32xi32>
    %c-1_i32_6 = arith.constant -1 : i32
    %13 = vector.broadcast %c-1_i32_6 : i32 to vector<8x32xi32>
    %14 = arith.addi %2, %13 : vector<8x32xi32>
    %c8_i32 = arith.constant 8 : i32
    %15 = vector.broadcast %c8_i32 : i32 to vector<8x32xi32>
    %16 = arith.cmpi slt, %14, %15 : vector<8x32xi32>
    %17 = arith.andi %12, %16 : vector<8x32xi1>
    %cst_7 = arith.constant 0.000000e+00 : f32
    %18 = vector.broadcast %cst_7 : f32 to vector<8x32xf32>
    %19 = arith.select %17, %8, %18 : vector<8x32xi1>, vector<8x32xf32>
    %20 = arith.addf %4, %19 : vector<8x32xf32>
    %c1 = arith.constant 1 : index
    %c0_8 = arith.constant 0 : index
    %c0_9 = arith.constant 0 : index
    %21 = vector.load %arg2[%c1, %c0_8, %c0_9] : memref<3x32x32xbf16, #tpu.memory_space<vmem>>, vector<1x32x32xbf16>
    %22 = vector.shape_cast %21 : vector<1x32x32xbf16> to vector<32x32xbf16>
    %cst_10 = arith.constant dense<0.000000e+00> : vector<8x32xf32>
    %23 = tpu.matmul %3, %22, %cst_10 {dimension_numbers = #tpu.dot_dimension_numbers<[1], [0], [0], [1], [0, 0, 1, 1], [], []>} : vector<8x32xbf16>, vector<32x32xbf16>, vector<8x32xf32> -> vector<8x32xf32>
    %24 = arith.addf %20, %23 : vector<8x32xf32>
    %c2 = arith.constant 2 : index
    %c0_11 = arith.constant 0 : index
    %c0_12 = arith.constant 0 : index
    %25 = vector.load %arg2[%c2, %c0_11, %c0_12] : memref<3x32x32xbf16, #tpu.memory_space<vmem>>, vector<1x32x32xbf16>
    %26 = vector.shape_cast %25 : vector<1x32x32xbf16> to vector<32x32xbf16>
    %cst_13 = arith.constant dense<0.000000e+00> : vector<8x32xf32>
    %27 = tpu.matmul %3, %26, %cst_13 {dimension_numbers = #tpu.dot_dimension_numbers<[1], [0], [0], [1], [0, 0, 1, 1], [], []>} : vector<8x32xbf16>, vector<32x32xbf16>, vector<8x32xf32> -> vector<8x32xf32>
    %c7_i32 = arith.constant 7 : i32
    %28 = tpu.dynamic_rotate %27 by %c7_i32 dim 0 : vector<8x32xf32>, i32 -> vector<8x32xf32>
    %c1_i32_14 = arith.constant 1 : i32
    %29 = vector.broadcast %c1_i32_14 : i32 to vector<8x32xi32>
    %30 = arith.addi %2, %29 : vector<8x32xi32>
    %c0_i32_15 = arith.constant 0 : i32
    %31 = vector.broadcast %c0_i32_15 : i32 to vector<8x32xi32>
    %32 = arith.cmpi sge, %30, %31 : vector<8x32xi32>
    %c1_i32_16 = arith.constant 1 : i32
    %33 = vector.broadcast %c1_i32_16 : i32 to vector<8x32xi32>
    %34 = arith.addi %2, %33 : vector<8x32xi32>
    %c8_i32_17 = arith.constant 8 : i32
    %35 = vector.broadcast %c8_i32_17 : i32 to vector<8x32xi32>
    %36 = arith.cmpi slt, %34, %35 : vector<8x32xi32>
    %37 = arith.andi %32, %36 : vector<8x32xi1>
    %cst_18 = arith.constant 0.000000e+00 : f32
    %38 = vector.broadcast %cst_18 : f32 to vector<8x32xf32>
    %39 = arith.select %37, %28, %38 : vector<8x32xi1>, vector<8x32xf32>
    %40 = arith.addf %24, %39 : vector<8x32xf32>
    %c0_19 = arith.constant 0 : index
    %c0_20 = arith.constant 0 : index
    %41 = vector.load %arg3[%c0_19, %c0_20] : memref<1x32xf32, #tpu.memory_space<vmem>>, vector<1x32xf32>
    %42 = vector.broadcast %41 : vector<1x32xf32> to vector<8x32xf32>
    %43 = arith.addf %40, %42 : vector<8x32xf32>
    %cst_21 = arith.constant 0.000000e+00 : f32
    %44 = vector.broadcast %cst_21 : f32 to vector<8x32xf32>
    %45 = arith.maximumf %43, %44 : vector<8x32xf32>
    %cst_22 = arith.constant dense<0.000000e+00> : vector<8xf32>
    %46 = vector.multi_reduction <add>, %45, %cst_22 [1] : vector<8x32xf32> to vector<8xf32>
    %47 = vector.shape_cast %46 : vector<8xf32> to vector<8x1xf32>
    %cst_23 = arith.constant 3.200000e+01 : f32
    %48 = vector.broadcast %cst_23 : f32 to vector<8x1xf32>
    %49 = arith.divf %47, %48 : vector<8x1xf32>
    %50 = arith.mulf %45, %45 : vector<8x32xf32>
    %cst_24 = arith.constant dense<0.000000e+00> : vector<8xf32>
    %51 = vector.multi_reduction <add>, %50, %cst_24 [1] : vector<8x32xf32> to vector<8xf32>
    %52 = vector.shape_cast %51 : vector<8xf32> to vector<8x1xf32>
    %cst_25 = arith.constant 3.200000e+01 : f32
    %53 = vector.broadcast %cst_25 : f32 to vector<8x1xf32>
    %54 = arith.divf %52, %53 : vector<8x1xf32>
    %55 = arith.mulf %49, %49 : vector<8x1xf32>
    %56 = arith.subf %54, %55 : vector<8x1xf32>
    %57 = vector.broadcast %49 : vector<8x1xf32> to vector<8x32xf32>
    %58 = arith.subf %45, %57 : vector<8x32xf32>
    %cst_26 = arith.constant 9.99999974E-6 : f32
    %59 = vector.broadcast %cst_26 : f32 to vector<8x1xf32>
    %60 = arith.addf %56, %59 : vector<8x1xf32>
    %61 = math.rsqrt %60 : vector<8x1xf32>
    %62 = vector.broadcast %61 : vector<8x1xf32> to vector<8x32xf32>
    %63 = arith.mulf %58, %62 : vector<8x32xf32>
    %c0_27 = arith.constant 0 : index
    %c0_28 = arith.constant 0 : index
    %64 = vector.load %arg4[%c0_27, %c0_28] : memref<1x32xf32, #tpu.memory_space<vmem>>, vector<1x32xf32>
    %65 = vector.broadcast %64 : vector<1x32xf32> to vector<8x32xf32>
    %66 = arith.mulf %63, %65 : vector<8x32xf32>
    %c0_29 = arith.constant 0 : index
    %c0_30 = arith.constant 0 : index
    %67 = vector.load %arg5[%c0_29, %c0_30] : memref<1x32xf32, #tpu.memory_space<vmem>>, vector<1x32xf32>
    %68 = vector.broadcast %67 : vector<1x32xf32> to vector<8x32xf32>
    %69 = arith.addf %66, %68 : vector<8x32xf32>
    %70 = arith.truncf %69 : vector<8x32xf32> to vector<8x32xbf16>
    %cst_31 = arith.constant 0.000000e+00 : f32
    %71 = vector.broadcast %cst_31 : f32 to vector<8x32xf32>
    %c0_32 = arith.constant 0 : index
    %c0_33 = arith.constant 0 : index
    %c0_34 = arith.constant 0 : index
    %72 = vector.load %arg6[%c0_32, %c0_33, %c0_34] : memref<3x32x32xbf16, #tpu.memory_space<vmem>>, vector<1x32x32xbf16>
    %73 = vector.shape_cast %72 : vector<1x32x32xbf16> to vector<32x32xbf16>
    %cst_35 = arith.constant dense<0.000000e+00> : vector<8x32xf32>
    %74 = tpu.matmul %70, %73, %cst_35 {dimension_numbers = #tpu.dot_dimension_numbers<[1], [0], [0], [1], [0, 0, 1, 1], [], []>} : vector<8x32xbf16>, vector<32x32xbf16>, vector<8x32xf32> -> vector<8x32xf32>
    %c1_i32_36 = arith.constant 1 : i32
    %75 = tpu.dynamic_rotate %74 by %c1_i32_36 dim 0 : vector<8x32xf32>, i32 -> vector<8x32xf32>
    %c-1_i32_37 = arith.constant -1 : i32
    %76 = vector.broadcast %c-1_i32_37 : i32 to vector<8x32xi32>
    %77 = arith.addi %2, %76 : vector<8x32xi32>
    %c0_i32_38 = arith.constant 0 : i32
    %78 = vector.broadcast %c0_i32_38 : i32 to vector<8x32xi32>
    %79 = arith.cmpi sge, %77, %78 : vector<8x32xi32>
    %c-1_i32_39 = arith.constant -1 : i32
    %80 = vector.broadcast %c-1_i32_39 : i32 to vector<8x32xi32>
    %81 = arith.addi %2, %80 : vector<8x32xi32>
    %c8_i32_40 = arith.constant 8 : i32
    %82 = vector.broadcast %c8_i32_40 : i32 to vector<8x32xi32>
    %83 = arith.cmpi slt, %81, %82 : vector<8x32xi32>
    %84 = arith.andi %79, %83 : vector<8x32xi1>
    %cst_41 = arith.constant 0.000000e+00 : f32
    %85 = vector.broadcast %cst_41 : f32 to vector<8x32xf32>
    %86 = arith.select %84, %75, %85 : vector<8x32xi1>, vector<8x32xf32>
    %87 = arith.addf %71, %86 : vector<8x32xf32>
    %c1_42 = arith.constant 1 : index
    %c0_43 = arith.constant 0 : index
    %c0_44 = arith.constant 0 : index
    %88 = vector.load %arg6[%c1_42, %c0_43, %c0_44] : memref<3x32x32xbf16, #tpu.memory_space<vmem>>, vector<1x32x32xbf16>
    %89 = vector.shape_cast %88 : vector<1x32x32xbf16> to vector<32x32xbf16>
    %cst_45 = arith.constant dense<0.000000e+00> : vector<8x32xf32>
    %90 = tpu.matmul %70, %89, %cst_45 {dimension_numbers = #tpu.dot_dimension_numbers<[1], [0], [0], [1], [0, 0, 1, 1], [], []>} : vector<8x32xbf16>, vector<32x32xbf16>, vector<8x32xf32> -> vector<8x32xf32>
    %91 = arith.addf %87, %90 : vector<8x32xf32>
    %c2_46 = arith.constant 2 : index
    %c0_47 = arith.constant 0 : index
    %c0_48 = arith.constant 0 : index
    %92 = vector.load %arg6[%c2_46, %c0_47, %c0_48] : memref<3x32x32xbf16, #tpu.memory_space<vmem>>, vector<1x32x32xbf16>
    %93 = vector.shape_cast %92 : vector<1x32x32xbf16> to vector<32x32xbf16>
    %cst_49 = arith.constant dense<0.000000e+00> : vector<8x32xf32>
    %94 = tpu.matmul %70, %93, %cst_49 {dimension_numbers = #tpu.dot_dimension_numbers<[1], [0], [0], [1], [0, 0, 1, 1], [], []>} : vector<8x32xbf16>, vector<32x32xbf16>, vector<8x32xf32> -> vector<8x32xf32>
    %c7_i32_50 = arith.constant 7 : i32
    %95 = tpu.dynamic_rotate %94 by %c7_i32_50 dim 0 : vector<8x32xf32>, i32 -> vector<8x32xf32>
    %c1_i32_51 = arith.constant 1 : i32
    %96 = vector.broadcast %c1_i32_51 : i32 to vector<8x32xi32>
    %97 = arith.addi %2, %96 : vector<8x32xi32>
    %c0_i32_52 = arith.constant 0 : i32
    %98 = vector.broadcast %c0_i32_52 : i32 to vector<8x32xi32>
    %99 = arith.cmpi sge, %97, %98 : vector<8x32xi32>
    %c1_i32_53 = arith.constant 1 : i32
    %100 = vector.broadcast %c1_i32_53 : i32 to vector<8x32xi32>
    %101 = arith.addi %2, %100 : vector<8x32xi32>
    %c8_i32_54 = arith.constant 8 : i32
    %102 = vector.broadcast %c8_i32_54 : i32 to vector<8x32xi32>
    %103 = arith.cmpi slt, %101, %102 : vector<8x32xi32>
    %104 = arith.andi %99, %103 : vector<8x32xi1>
    %cst_55 = arith.constant 0.000000e+00 : f32
    %105 = vector.broadcast %cst_55 : f32 to vector<8x32xf32>
    %106 = arith.select %104, %95, %105 : vector<8x32xi1>, vector<8x32xf32>
    %107 = arith.addf %91, %106 : vector<8x32xf32>
    %c0_56 = arith.constant 0 : index
    %c0_57 = arith.constant 0 : index
    %108 = vector.load %arg7[%c0_56, %c0_57] : memref<1x32xf32, #tpu.memory_space<vmem>>, vector<1x32xf32>
    %109 = vector.broadcast %108 : vector<1x32xf32> to vector<8x32xf32>
    %110 = arith.addf %107, %109 : vector<8x32xf32>
    %cst_58 = arith.constant 0.000000e+00 : f32
    %111 = vector.broadcast %cst_58 : f32 to vector<8x32xf32>
    %112 = arith.maximumf %110, %111 : vector<8x32xf32>
    %cst_59 = arith.constant dense<0.000000e+00> : vector<8xf32>
    %113 = vector.multi_reduction <add>, %112, %cst_59 [1] : vector<8x32xf32> to vector<8xf32>
    %114 = vector.shape_cast %113 : vector<8xf32> to vector<8x1xf32>
    %cst_60 = arith.constant 3.200000e+01 : f32
    %115 = vector.broadcast %cst_60 : f32 to vector<8x1xf32>
    %116 = arith.divf %114, %115 : vector<8x1xf32>
    %117 = arith.mulf %112, %112 : vector<8x32xf32>
    %cst_61 = arith.constant dense<0.000000e+00> : vector<8xf32>
    %118 = vector.multi_reduction <add>, %117, %cst_61 [1] : vector<8x32xf32> to vector<8xf32>
    %119 = vector.shape_cast %118 : vector<8xf32> to vector<8x1xf32>
    %cst_62 = arith.constant 3.200000e+01 : f32
    %120 = vector.broadcast %cst_62 : f32 to vector<8x1xf32>
    %121 = arith.divf %119, %120 : vector<8x1xf32>
    %122 = arith.mulf %116, %116 : vector<8x1xf32>
    %123 = arith.subf %121, %122 : vector<8x1xf32>
    %124 = vector.broadcast %116 : vector<8x1xf32> to vector<8x32xf32>
    %125 = arith.subf %112, %124 : vector<8x32xf32>
    %cst_63 = arith.constant 9.99999974E-6 : f32
    %126 = vector.broadcast %cst_63 : f32 to vector<8x1xf32>
    %127 = arith.addf %123, %126 : vector<8x1xf32>
    %128 = math.rsqrt %127 : vector<8x1xf32>
    %129 = vector.broadcast %128 : vector<8x1xf32> to vector<8x32xf32>
    %130 = arith.mulf %125, %129 : vector<8x32xf32>
    %c0_64 = arith.constant 0 : index
    %c0_65 = arith.constant 0 : index
    %131 = vector.load %arg8[%c0_64, %c0_65] : memref<1x32xf32, #tpu.memory_space<vmem>>, vector<1x32xf32>
    %132 = vector.broadcast %131 : vector<1x32xf32> to vector<8x32xf32>
    %133 = arith.mulf %130, %132 : vector<8x32xf32>
    %c0_66 = arith.constant 0 : index
    %c0_67 = arith.constant 0 : index
    %134 = vector.load %arg9[%c0_66, %c0_67] : memref<1x32xf32, #tpu.memory_space<vmem>>, vector<1x32xf32>
    %135 = vector.broadcast %134 : vector<1x32xf32> to vector<8x32xf32>
    %136 = arith.addf %133, %135 : vector<8x32xf32>
    %c0_68 = arith.constant 0 : index
    %c0_69 = arith.constant 0 : index
    %137 = vector.load %arg10[%c0_68, %c0_69] : memref<1x32xf32, #tpu.memory_space<vmem>>, vector<1x32xf32>
    %cst_70 = arith.constant dense<0.000000e+00> : vector<1x8xf32>
    %138 = tpu.matmul %137, %136, %cst_70 {dimension_numbers = #tpu.dot_dimension_numbers<[1], [1], [0], [0], [0, 0, 1, 0], [], []>} : vector<1x32xf32>, vector<8x32xf32>, vector<1x8xf32> -> vector<1x8xf32>
    %c0_71 = arith.constant 0 : index
    %139 = memref.load %arg11[%c0_71] : memref<1xf32, #tpu.memory_space<smem>>
    %140 = vector.broadcast %139 : f32 to vector<1x8xf32>
    %141 = arith.addf %138, %140 : vector<1x8xf32>
    %cst_72 = arith.constant 0.000000e+00 : f32
    %142 = vector.broadcast %cst_72 : f32 to vector<1x8xf32>
    %143 = arith.maximumf %141, %142 : vector<1x8xf32>
    %144 = vector.shape_cast %143 : vector<1x8xf32> to vector<1x1x8xf32>
    %c0_73 = arith.constant 0 : index
    %c0_74 = arith.constant 0 : index
    %c0_75 = arith.constant 0 : index
    %145 = vector.load %arg12[%c0_73, %c0_74, %c0_75] : memref<1x1x8xf32, #tpu.memory_space<vmem>>, vector<1x1x8xf32>
    tpu.vector_store %arg12[%c0_73, %c0_74, %c0_75], %144 {strides = array<i32>} : memref<1x1x8xf32, #tpu.memory_space<vmem>>, vector<1x1x8xf32>,
    return
  }
  func.func @transform_0(%arg0: i32) -> (i32, i32, i32) {
    %c0_i32 = arith.constant 0 : i32
    %c0_i32_0 = arith.constant 0 : i32
    %c0_i32_1 = arith.constant 0 : i32
    return %arg0, %c0_i32, %c0_i32_0 : i32, i32, i32
  }
  func.func @transform_1(%arg0: i32) -> (i32, i32, i32) {
    %c0_i32 = arith.constant 0 : i32
    %c0_i32_0 = arith.constant 0 : i32
    %c0_i32_1 = arith.constant 0 : i32
    %c0_i32_2 = arith.constant 0 : i32
    return %c0_i32, %c0_i32_0, %c0_i32_1 : i32, i32, i32
  }
  func.func @transform_2(%arg0: i32) -> (i32, i32) {
    %c0_i32 = arith.constant 0 : i32
    %c0_i32_0 = arith.constant 0 : i32
    %c0_i32_1 = arith.constant 0 : i32
    return %c0_i32, %c0_i32_0 : i32, i32
  }
  func.func @transform_3(%arg0: i32) -> (i32, i32) {
    %c0_i32 = arith.constant 0 : i32
    %c0_i32_0 = arith.constant 0 : i32
    %c0_i32_1 = arith.constant 0 : i32
    return %c0_i32, %c0_i32_0 : i32, i32
  }
  func.func @transform_4(%arg0: i32) -> (i32, i32) {
    %c0_i32 = arith.constant 0 : i32
    %c0_i32_0 = arith.constant 0 : i32
    %c0_i32_1 = arith.constant 0 : i32
    return %c0_i32, %c0_i32_0 : i32, i32
  }
  func.func @transform_5(%arg0: i32) -> (i32, i32, i32) {
    %c0_i32 = arith.constant 0 : i32
    %c0_i32_0 = arith.constant 0 : i32
    %c0_i32_1 = arith.constant 0 : i32
    %c0_i32_2 = arith.constant 0 : i32
    return %c0_i32, %c0_i32_0, %c0_i32_1 : i32, i32, i32
  }
  func.func @transform_6(%arg0: i32) -> (i32, i32) {
    %c0_i32 = arith.constant 0 : i32
    %c0_i32_0 = arith.constant 0 : i32
    %c0_i32_1 = arith.constant 0 : i32
    return %c0_i32, %c0_i32_0 : i32, i32
  }
  func.func @transform_7(%arg0: i32) -> (i32, i32) {
    %c0_i32 = arith.constant 0 : i32
    %c0_i32_0 = arith.constant 0 : i32
    %c0_i32_1 = arith.constant 0 : i32
    return %c0_i32, %c0_i32_0 : i32, i32
  }
  func.func @transform_8(%arg0: i32) -> (i32, i32) {
    %c0_i32 = arith.constant 0 : i32
    %c0_i32_0 = arith.constant 0 : i32
    %c0_i32_1 = arith.constant 0 : i32
    return %c0_i32, %c0_i32_0 : i32, i32
  }
  func.func @transform_9(%arg0: i32) -> (i32, i32) {
    %c0_i32 = arith.constant 0 : i32
    %c0_i32_0 = arith.constant 0 : i32
    %c0_i32_1 = arith.constant 0 : i32
    return %c0_i32, %c0_i32_0 : i32, i32
  }
  func.func @transform_10(%arg0: i32) -> i32 {
    %c0_i32 = arith.constant 0 : i32
    %c0_i32_0 = arith.constant 0 : i32
    return %c0_i32 : i32
  }
  func.func @transform_11(%arg0: i32) -> (i32, i32, i32) {
    %c0_i32 = arith.constant 0 : i32
    %c0_i32_0 = arith.constant 0 : i32
    %c0_i32_1 = arith.constant 0 : i32
    return %arg0, %c0_i32, %c0_i32_0 : i32, i32, i32
  }
}

</mosaic_0001>

<bundles_post_ra>
// kernel: tpu_custom_call.1
= control target key start
LH: loop header
LB: loop body
LE: loop exit
PB: predicated region body
PF: predicated region fallthrough
CT: control target
= control target key end

     0   :  { %s1800_s0 = inlined_call_operand.hbm [shape: f32[2,8,32], index: 0, kind: input, shape index: {}]   ;;  %s1801_s1 = inlined_call_operand.hbm [shape: bf16[3,32,32], index: 1, kind: input, shape index: {}]   ;;  %s1802_s2 = inlined_call_operand.vmem [shape: f32[1,32], index: 2, kind: input, shape index: {}]   ;;  %s1803_s3 = inlined_call_operand.vmem [shape: f32[1,32], index: 3, kind: input, shape index: {}]   ;;  %s1804_s4 = inlined_call_operand.vmem [shape: f32[1,32], index: 4, kind: input, shape index: {}]   ;;  %s1805_s5 = inlined_call_operand.hbm [shape: bf16[3,32,32], index: 5, kind: input, shape index: {}]   ;;  %s1806_s6 = inlined_call_operand.vmem [shape: f32[1,32], index: 6, kind: input, shape index: {}]   ;;  %s1807_s7 = inlined_call_operand.vmem [shape: f32[1,32], index: 7, kind: input, shape index: {}]   ;;  %s1808_s8 = inlined_call_operand.vmem [shape: f32[1,32], index: 8, kind: input, shape index: {}]   ;;  %s1809_s9 = inlined_call_operand.vmem [shape: f32[1,32], index: 9, kind: input, shape index: {}]   ;;  %s1810_s10 = inlined_call_operand.<no memory space> [shape: f32[1], index: 10, kind: input, shape index: {}]   ;;  %s1811_s11 = inlined_call_operand.hbm [shape: f32[2,1,8], index: 11, kind: output, shape index: {}]  }
   0x1   :  { %16 = sst [smem:[#allocation2]] %s1810_s10 }
   0x2   :  { %17 = vsyncpa [#allocation4], 0 }
   0x3   :  { %19 = vsyncpa [#allocation4 + $0x1], 0 }
   0x4   :  { %20 = vsyncpa [#allocation7], 0 }
   0x5   :  { %21 = vsyncpa [#allocation5], 0 }
   0x6   :  { %23 = vsyncpa [#allocation5 + $0x1], 0  ;;  %s1496_s19 = smov 0   ;;  %s1498_s20 = smov 0  }
   0x7   :  { %s1500_s21 = smov 0   ;;  %s1502_s22 = smov 0  }
   0x8 LB: > { %1817 = sst [smem:[#allocation13_spill]] %s1411_s19  ;;  %s1517_s10 = sadd.s32 4294967295, %s1423_s22   ;;  %s1423_s22 = sphi %s1502_s22, %s1837_s22   ;;  %s1419_s21 = sphi %s1500_s21, %s1836_s21   ;;  %s1415_s20 = sphi %s1498_s20, %s1835_s20   ;;  %s1411_s19 = sphi %s1496_s19, %s1834_s19  }
   0x9   : > { %s1067_s23 = sadd.s32 4294967294, %s1423_s22   ;;  %p49_p0 = scmp.ne.s32.totalorder %s1415_s20, %s1411_s19 }
   0xa   : > { %p1812_p1 = scmp.eq.s32.totalorder %s1517_s10, 0  ;;  %p289_p3 = scmp.eq.s32.totalorder %s1067_s23, 1 }
   0xb   : > { %p1068_p5 = scmp.ge.s32.totalorder %s1423_s22, 1  ;;  %p296_p7 = scmp.lt.s32.totalorder %s1423_s22, 3 }
   0xc   : > { %p1526_p4 = por %p1812_p1, %p49_p0  ;;  %p1531_p6 = por %p289_p3, %p49_p0 }
   0xd   : > { %p1536_p8 = pnand %p1068_p5, %p296_p7  ;;  %s1425_s27 = smov [#allocation6]  }
   0xe   : > { %s1818_s24 = scalar_select %p1526_p4, 1, 0 }
   0xf   : > { %s1819_s25 = scalar_select %p1531_p6, 1, 0 }
  0x10   : > { %s308_s28 = sshll.u32 %s1425_s27, 4  ;;  %p1192_p9 = pneg %p1536_p8  ;;  %s1540_s28 = int_to_ptr.vmem [resolvable:$true] %s308_s28 }
  0x11   : > { %1820 = sst [smem:[#allocation14_spill]] %s1819_s25  ;;  %s1426_s30 = smov [#allocation8]  }
  0x12   : > { %p1547_p11 = pnand %p1192_p9, %p1812_p1  ;;  %s330_s12 = sshll.u32 %s1426_s30, 4  ;;  %s1551_s12 = int_to_ptr.vmem [resolvable:$true] %s330_s12 }
  0x13   : > { %s1267_s15 = scalar_lea.hbm %s1801_s1, 768 }
  0x14   : > { %p1268_p12 = scmp.ne.s32.totalorder %s1801_s1, %s1267_s15  ;;  %p1269_p13 = pneg %p1547_p11 }
  0x15   : > { %p1274_p5 = scmp.lt.u32.totalorder %s1267_s15, %s1801_s1 }
  0x16   : > { %p1270_p0 = pnand %p1269_p13, %p1268_p12 }
  0x18   : > { %p1271_p3 = pneg %p1270_p0 }
  0x1a   : > { %p1276_p7 = pnand %p1274_p5, %p1271_p3 }
  0x1c   : > { %1279 = shalt.err (!%p1276_p7)
}
  0x1d   : > { %s1280_s27 = scalar_lea.vmem %s1540_s28, 768  ;;  %p1288_p2 = scmp.lt.s32.totalorder %s1540_s28, %s1540_s28 }
  0x1e   : > { %p1281_p9 = scmp.ne.s32.totalorder %s1540_s28, %s1280_s27  ;;  %p1289_p12 = scmp.lt.s32.totalorder %s1280_s27, %s1280_s27 }
  0x20   : > { %p1283_p10 = pnand %p1281_p9, %p1269_p13  ;;  %p1290_p0 = por %p1289_p12, %p1288_p2 }
  0x22   : > { %p1284_p1 = pneg %p1283_p10 }
  0x24   : > { %p1291_p6 = pnand %p1290_p0, %p1284_p1 }
  0x26   : > { %1294 = shalt.err (!%p1291_p6)
}
  0x27   : > { %s1427_s30 = smov 64   ;;  %s1428_s13 = smov 4  }
  0x28   : > { %1195 = dma.hbm_to_vmem [thread:$0]  (!%p1547_p11), %s1801_s1, 768, %s1540_s28, [#allocation7], %s1427_s30, %s1427_s30, %s1428_s13  }
  0x29   : > { %s1295_s18 = scalar_lea.hbm %s1805_s5, 768 }
  0x2a   : > { %p1296_p2 = scmp.ne.s32.totalorder %s1805_s5, %s1295_s18  ;;  %p1302_p10 = scmp.lt.u32.totalorder %s1295_s18, %s1805_s5 }
  0x2c   : > { %p1298_p1 = pnand %p1296_p2, %p1269_p13 }
  0x2e   : > { %p1299_p6 = pneg %p1298_p1 }
  0x30   : > { %p1304_p3 = pnand %p1302_p10, %p1299_p6 }
  0x32   : > { %1307 = shalt.err (!%p1304_p3)
}
  0x33   : > { %s1308_s28 = scalar_lea.vmem %s1551_s12, 768  ;;  %p1316_p12 = scmp.lt.s32.totalorder %s1551_s12, %s1551_s12 }
  0x34   : > { %p1309_p5 = scmp.ne.s32.totalorder %s1551_s12, %s1308_s28  ;;  %p1317_p0 = scmp.lt.s32.totalorder %s1308_s28, %s1308_s28 }
  0x36   : > { %p1311_p7 = pnand %p1309_p5, %p1269_p13  ;;  %p1318_p2 = por %p1317_p0, %p1316_p12 }
  0x38   : > { %p1312_p9 = pneg %p1311_p7 }
  0x3a   : > { %p1319_p1 = pnand %p1318_p2, %p1312_p9 }
  0x3c   : > { %1322 = shalt.err (!%p1319_p1)
}
  0x3d   : > { %1198 = dma.hbm_to_vmem [thread:$0]  (!%p1547_p11), %s1805_s5, 768, %s1551_s12, [#allocation7], %s1427_s30, %s1427_s30, %s1428_s13  }
  0x3e   : > { %s1606_s14 = sadd.s32 1, %s1423_s22   ;;  %s36_s29 = sadd.s32 1, %s1419_s21 }
  0x3f   : > { %s33_s15 = ssub.s32 %s1423_s22, %s1606_s14  ;;  %p43_p13 = scmp.ne.s32.totalorder %s1419_s21, %s1415_s20 }
  0x40   : > { %p34_p6 = scmp.eq.s32.totalorder %s33_s15, 0  ;;  %p44_p10 = scmp.eq.s32.totalorder %s1423_s22, 0 }
  0x41   : > { %p1823_p3 = scmp.eq.s32.totalorder %s1517_s10, 1  ;;  %p1209_p7 = scmp.lt.s32.totalorder %s1423_s22, 2 }
  0x42   : > { %s1622_s17 = scalar_select %p34_p6, %s1419_s21, %s36_s29  }
  0x43   : > { %p1616_p5 = por %p1823_p3, %p43_p13  ;;  %p45_p9 = por %p44_p10, %p43_p13 }
  0x44   : > { %s359_s18 = sand.u32 1, %s1419_s21   ;;  %s1073_s12 = sshll.u32 %s1423_s22, 7 }
  0x45   : > { %s1824_s16 = scalar_select %p1616_p5, 1, 0 }
  0x46   : > { %s1072_s23 = sshll.u32 %s359_s18, 3  ;;  %s1629_s27 = scalar_lea.hbm %s1800_s0, %s1073_s12 }
  0x47   : > { %s363_s28 = scalar_lea.vmem [#allocation3], %s1072_s23  ;;  %p1633_p11 = pnand %p1209_p7, %p45_p9 }
  0x48   : > { %s370_s19 = sshll.u32 %s363_s28, 4  ;;  %s360_s29 = scalar_lea.sflag [#allocation4], %s359_s18  ;;  %s1631_s19 = int_to_ptr.vmem [resolvable:$true] %s370_s19 }
  0x49   : > { %s1323_s15 = scalar_lea.hbm %s1629_s27, 128  ;;  %p1325_p0 = pneg %p1633_p11 }
  0x4a   : > { %p1324_p12 = scmp.ne.s32.totalorder %s1629_s27, %s1323_s15  ;;  %s1328_s30 = scalar_lea.hbm %s1800_s0, 256 }
  0x4b   : > { %p1329_p13 = scmp.lt.u32.totalorder %s1629_s27, %s1800_s0  ;;  %p1330_p6 = scmp.lt.u32.totalorder %s1328_s30, %s1323_s15 }
  0x4c   : > { %p1326_p2 = pnand %p1325_p0, %p1324_p12  ;;  %p1332_p3 = scmp.lt.u32.totalorder %s1323_s15, %s1629_s27 }
  0x4d   : > { %p1331_p10 = por %p1330_p6, %p1329_p13 }
  0x4e   : > { %p1327_p1 = pneg %p1326_p2 }
  0x4f   : > { %p1333_p7 = por %p1332_p3, %p1331_p10 }
  0x51   : > { %p1334_p9 = pnand %p1333_p7, %p1327_p1 }
  0x53   : > { %1337 = shalt.err (!%p1334_p9)
}
  0x54   : > { %s1338_s18 = scalar_lea.vmem %s1631_s19, 128  ;;  %s1429_s12 = smov [#allocation3]  }
  0x55   : > { %p1339_p12 = scmp.ne.s32.totalorder %s1631_s19, %s1338_s18  ;;  %s1343_s23 = sshll.u32 %s1429_s12, 4  ;;  %s1344_s23 = int_to_ptr.vmem [resolvable:$false] %s1343_s23 }
  0x56   : > { %s1345_s13 = scalar_lea.vmem %s1344_s23, 256  ;;  %p1346_p4 = scmp.lt.s32.totalorder %s1631_s19, %s1344_s23 }
  0x57   : > { %p1341_p2 = pnand %p1339_p12, %p1325_p0  ;;  %p1347_p13 = scmp.lt.s32.totalorder %s1345_s13, %s1338_s18 }
  0x59   : > { %p1342_p5 = pneg %p1341_p2  ;;  %p1348_p6 = por %p1347_p13, %p1346_p4 }
  0x5b   : > { %p1349_p10 = pnand %p1348_p6, %p1342_p5 }
  0x5d   : > { %1352 = shalt.err (!%p1349_p10)
}
  0x5e   : > { %1202 = dma.hbm_to_vmem [thread:$0]  (!%p1633_p11), %s1629_s27, 128, %s1631_s19, %s360_s29  }
  0x5f   : > { %379 = sbr.rel (%p1536_p8) target bundleno = 1149 (0x47d), region = 64  ;;  %s1665_s15 = sand.u32 (!%p1536_p8), 1, %s1415_s20  }
  0x60   : > { %s1075_s30 = sshll.u32 (!%p1536_p8), %s1665_s15, 3  ;;  %s382_s28 = scalar_lea.sflag (!%p1536_p8), [#allocation4], %s1665_s15 }
  0x61   : > { %s385_s18 = scalar_lea.vmem (!%p1536_p8), [#allocation3], %s1075_s30  ;;  %p1826_p4 = scmp.ne.s32.totalorder (!%p1536_p8), %s1818_s24, 0 }
  0x66   : > { %1398 = dma.done.wait (%p1826_p4), %s382_s28, 128  }
  0x67   : > { %1400 = vsyncadd (%p1826_p4), %s382_s28, 4294967168  ;;  %p1827_p5 = scmp.eq.s32.totalorder %s1517_s10, 0 }
  0x69   : > { %1402 = dma.done.wait (%p1827_p5), [#allocation7], 1536   ;;  %p1828_p11 = pmov %p1827_p5 }
  0x6a   : > { %v1430_v0 = vmov 0.0   ;;  %vm1431_vm0 = vmmov 0   ;;  %v1251_v1 = vld [vmem:[#allocation6] sm:$0xff]   ;;  %v1252_v2 = vld [vmem:[#allocation6 + $0x10] sm:$0xff]   ;;  %v1253_v3 = vld [vmem:[#allocation6 + $0x8] sm:$0xff]   ;;  %vm452_vm1 = vcmask 261120   ;;  %v433_v9 = vlaneseq }
  0x6b   : > { %1404 = vsyncadd (%p1828_p11), [#allocation7], 4294965760  ;;  %1127 = vmatprep.subr.bf16.mxu0 %v1430_v0  ;;  %1135 = vmatprep.subr.bf16.mxu1 %v1430_v0  ;;  %v432_v4 = vld [vmem:[%s385_s18] sm:$0xff]  ;;  %v1255_v7 = vld [vmem:[#allocation6 + $0x20] sm:$0xff]   ;;  %s888_s27 = sld [smem:[#allocation2]]  ;;  %s1104_s19 = sshll.u32 %s1517_s10, 4 }
  0x6c   : > { %1131 = vmatprep.mubr.msk.bf16.mxu0 %vm1431_vm0, %v1430_v0  ;;  %1139 = vmatprep.mubr.msk.bf16.mxu1 %vm1431_vm0, %v1430_v0  ;;  %v1254_v5 = vld [vmem:[#allocation6 + $0x18] sm:$0xff]   ;;  %v435_v6 = vpack.c.bf16 %v432_v4, %v432_v4  ;;  %v1256_v8 = vld [vmem:[#allocation6 + $0x28] sm:$0xff]   ;;  %v434_v10 = vshrl.u32 %v433_v9, 7  ;;  %v1087_v30 = vld [vmem:[%s1802_s2] ss:$0 sm:$0xff]  ;;  %s430_s25 = scalar_lea.vmem [#allocation9], %s1665_s15  ;;  %s1756_s13 = scalar_lea.hbm %s1811_s11, %s1104_s19 }
  0x6d   : > { %1128 = vmatpush3.bf16.msra.mxu0 %v1251_v1  ;;  %1136 = vmatpush3.bf16.msra.mxu1 %v1252_v2  ;;  %v1257_v37 = vld [vmem:[#allocation8] sm:$0xff]   ;;  %v1258_v38 = vld [vmem:[#allocation8 + $0x10] sm:$0xff]   ;;  %v1259_v39 = vld [vmem:[#allocation8 + $0x8] sm:$0xff]   ;;  %s982_s29 = sshll.u32 %s430_s25, 4  ;;  %vm967_vm4 = vcmask 57344   ;;  %s970_s30 = scalar_lea.sflag [#allocation5], %s1665_s15  ;;  %s1758_s29 = int_to_ptr.vmem [resolvable:$true] %s982_s29 }
  0x6e   : > { %1129 = vmatprep.subr.bf16.mxu0 %v1430_v0  ;;  %1137 = vmatprep.subr.bf16.mxu1 %v1430_v0  ;;  %v1698_v11 = vadd.s32 4294967295, %v434_v10  ;;  %v1703_v22 = vadd.s32 1, %v434_v10  ;;  %v1260_v40 = vld [vmem:[#allocation8 + $0x18] sm:$0xff]   ;;  %v1088_v50 = vld [vmem:[%s1803_s3] ss:$0 sm:$0xff]  ;;  %v1262_v57 = vld [vmem:[#allocation8 + $0x28] sm:$0xff]  }
  0x6f   : > { %v1089_v52 = vld [vmem:[%s1804_s4] ss:$0 sm:$0xff]  ;;  %s1353_s28 = scalar_lea.vmem %s1758_s29, 16  ;;  %p1829_p0 = scmp.ne.s32.totalorder %s1824_s16, 0 }
  0x70   : > { %vm498_vm2 = vcmp.ge.s32.totalorder %v1698_v11, 0  ;;  %vm621_vm3 = vcmp.lt.s32.totalorder %v1703_v22, 8  ;;  %v1261_v55 = vld [vmem:[#allocation8 + $0x20] sm:$0xff]   ;;  %p1354_p8 = scmp.ne.s32.totalorder %s1758_s29, %s1353_s28  ;;  %s1432_s10 = smov [#allocation9]  }
  0x71   : > { %1130 = vmatpush3.bf16.msra.mxu0 %v1253_v3  ;;  %1138 = vmatpush3.bf16.msra.mxu1 %v1254_v5  ;;  %s1357_s18 = sshll.u32 %s1432_s10, 4  ;;  %s1358_s18 = int_to_ptr.vmem [resolvable:$false] %s1357_s18 }
  0x72   : > { %1143 = vmatprep.subr.bf16.mxu0 %v1430_v0  ;;  %1151 = vmatprep.subr.bf16.mxu1 %v1430_v0  ;;  %p1355_p1 = pnand %p1354_p8, %p1829_p0  ;;  %s1359_s24 = scalar_lea.vmem %s1358_s18, 32 }
  0x73   : > { %p1360_p7 = scmp.lt.s32.totalorder %s1758_s29, %s1358_s18  ;;  %p1361_p9 = scmp.lt.s32.totalorder %s1359_s24, %s1353_s28 }
  0x74   : > { %1132 = vmatmul.mubr.msk.bf16.vlgmr.msra.gmra.mrb[0].mxu0 %vm452_vm1, %v435_v6  ;;  %1140 = vmatmul.mubr.msk.bf16.vlgmr.msra.gmra.mrb[0].mxu1 %vm452_vm1, %v435_v6  ;;  %p1356_p3 = pneg %p1355_p1 }
  0x75   : > { %1144 = vmatpush3.bf16.msra.mxu0 %v1255_v7  ;;  %1147 = vmatprep.mubr.msk.bf16.mxu0 %vm1431_vm0, %v1430_v0  ;;  %p1362_p12 = por %p1361_p9, %p1360_p7 }
  0x76   : > { %1145 = vmatprep.subr.bf16.mxu0 %v1430_v0  ;;  %1155 = vmatprep.mubr.msk.bf16.mxu1 %vm1431_vm0, %v1430_v0 }
  0x77   : > { %1152 = vmatpush3.bf16.msra.mxu1 %v1257_v37  ;;  %p1363_p2 = pnand %p1362_p12, %p1356_p3 }
  0x78   : > { %1153 = vmatprep.subr.bf16.mxu1 %v1430_v0 }
  0x79   : > { %1146 = vmatpush3.bf16.msra.mxu0 %v1256_v8 }
  0x7a   : > { %1159 = vmatprep.subr.bf16.mxu0 %v1430_v0 }
  0x7b   : > { %1154 = vmatpush3.bf16.msra.mxu1 %v1259_v39 }
  0x7c   : > { %1148 = vmatmul.mubr.msk.bf16.vlgmr.msra.gmra.mrb[4].mxu0 %vm452_vm1, %v435_v6  ;;  %1167 = vmatprep.subr.bf16.mxu1 %v1430_v0 }
  0x7d   : > { %1163 = vmatprep.mubr.msk.bf16.mxu0 %vm1431_vm0, %v1430_v0  ;;  %1160 = vmatpush3.bf16.msra.mxu0 %v1258_v38 }
  0x7e   : > { %1161 = vmatprep.subr.bf16.mxu0 %v1430_v0 }
  0x81   : > { %1162 = vmatpush3.bf16.msra.mxu0 %v1260_v40 }
  0x82   : > { %1175 = vmatprep.subr.mxu0 %v1430_v0 }
 0x147   : > { %v490_v12 = vpop.f32.mrb[0].mxu0  ;;  %v554_v15 = vpop.f32.mrb[0].mxu1 }
 0x148   : > { %v496_v13 = vrot.slane %v490_v12, 7  ;;  %v1133_v14 = vpop.f32.mrb[1].mxu0  ;;  %v1141_v17 = vpop.f32.mrb[1].mxu1  ;;  %v1099_v12 = vld [vmem:[%s1806_s6] ss:$0 sm:$0xff] }
 0x149   : > { %v493_v16 = vpop.f32.mrb[2].mxu0  ;;  %v557_v20 = vpop.f32.mrb[2].mxu1 }
 0x14a   : > { %v1134_v18 = vpop.f32.mrb[3].mxu0  ;;  %v501_v19 = vsel %vm498_vm2, %v496_v13, 0.0  ;;  %v1142_v23 = vpop.f32.mrb[3].mxu1 }
 0x14b   : > { %v560_v21 = vadd.f32 %v554_v15, %v501_v19 }
 0x14f   : > { %v612_v24 = vpop.f32.mrb[4].mxu0 }
 0x150   : > { %v618_v25 = vrot.slane %v612_v24, 1  ;;  %v1149_v26 = vpop.f32.mrb[5].mxu0 }
 0x151   : > { %v615_v27 = vpop.f32.mrb[6].mxu0 }
 0x152   : > { %v623_v28 = vsel %vm621_vm3, %v618_v25, 0.0  ;;  %v1150_v29 = vpop.f32.mrb[7].mxu0  ;;  %v1100_v27 = vld [vmem:[%s1807_s7] ss:$0 sm:$0xff] }
 0x153   : > { %v624_v31 = vadd.f32 %v623_v28, %v560_v21  ;;  %v1101_v29 = vld [vmem:[%s1808_s8] ss:$0 sm:$0xff] }
 0x155   : > { %v632_v32 = vadd.f32 %v1087_v30, %v624_v31 }
 0x157   : > { %v633_v33 = vmax.f32 %v632_v32, 0.0  ;;  %v887_v32 = vld [vmem:[%s1809_s9] sm:$0x1] }
 0x159   : > { %v634_v34 = vsel %vm452_vm1, %v633_v33, 0.0  ;;  %v639_v35 = vmul.f32 %v633_v33, %v633_v33 }
 0x15a   : > { %635 = vadd.xlane.f32.xlu0 %v634_v34 }
 0x15b   : > { %v640_v36 = vsel %vm452_vm1, %v639_v35, 0.0 }
 0x15e   : > { %641 = vadd.xlane.f32.xlu0 %v640_v36 }
 0x1e7   : > { %v636_v41 = vpop.xlane.xlu0 %635 }
 0x1e8   : > { %v638_v42 = vmul.f32 0.03125, %v636_v41 }
 0x1ea   : > { %v644_v44 = vmul.f32 %v638_v42, %v638_v42  ;;  %v646_v48 = vsub.f32 %v633_v33, %v638_v42  ;;  %v889_v33 = vstv %s888_s27 }
 0x1eb   : > { %v642_v43 = vpop.xlane.xlu0 %641 }
 0x1ec   : > { %v643_v45 = vmul.f32 0.03125, %v642_v43 }
 0x1ee   : > { %v645_v46 = vsub.f32 %v643_v45, %v644_v44 }
 0x1f0   : > { %v647_v47 = vadd.f32 1e-05, %v645_v46 }
 0x1f2   : > { %1263 = vrsqrt.f32 %v647_v47 }
 0x1fc   : > { %v1264_v49 = vpop.eup %1263 }
 0x1fd   : > { %v649_v51 = vmul.f32 %v1264_v49, %v646_v48 }
 0x1ff   : > { %v657_v53 = vmul.f32 %v1088_v50, %v649_v51 }
 0x201   : > { %v665_v54 = vadd.f32 %v1089_v52, %v657_v53 }
 0x203   : > { %v666_v56 = vpack.c.bf16 %v665_v54, %v665_v54 }
 0x205   : > { %1156 = vmatmul.mubr.msk.bf16.vlgmr.msra.gmra.mrb[4].mxu1 %vm452_vm1, %v666_v56  ;;  %1164 = vmatmul.mubr.msk.bf16.vlgmr.msra.gmra.mrb[8].mxu0 %vm452_vm1, %v666_v56 }
 0x206   : > { %1168 = vmatpush3.bf16.msra.mxu1 %v1261_v55  ;;  %1171 = vmatprep.mubr.msk.bf16.mxu1 %vm1431_vm0, %v1430_v0 }
 0x207   : > { %1169 = vmatprep.subr.bf16.mxu1 %v1430_v0  ;;  %1177 = vmatprep.mubr.msk.f32.mxu0 %vm1431_vm0, %v1430_v0 }
 0x20a   : > { %1170 = vmatpush3.bf16.msra.mxu1 %v1262_v57 }
 0x20d   : > { %1172 = vmatmul.mubr.msk.bf16.vlgmr.msra.gmra.mrb[8].mxu1 %vm452_vm1, %v666_v56 }
 0x2d8   : > { %v720_v58 = vpop.f32.mrb[4].mxu1  ;;  %v780_v59 = vpop.f32.mrb[8].mxu0 }
 0x2d9   : > { %v726_v60 = vrot.slane %v720_v58, 7  ;;  %v1157_v61 = vpop.f32.mrb[5].mxu1  ;;  %v1165_v62 = vpop.f32.mrb[9].mxu0 }
 0x2da   : > { %v723_v63 = vpop.f32.mrb[6].mxu1  ;;  %v783_v1 = vpop.f32.mrb[10].mxu0 }
 0x2db   : > { %v727_v2 = vsel %vm498_vm2, %v726_v60, 0.0  ;;  %v1158_v3 = vpop.f32.mrb[7].mxu1  ;;  %v1166_v4 = vpop.f32.mrb[11].mxu0 }
 0x2dc   : > { %v786_v5 = vadd.f32 %v780_v59, %v727_v2 }
 0x2e0   : > { %v838_v6 = vpop.f32.mrb[8].mxu1 }
 0x2e1   : > { %v844_v7 = vrot.slane %v838_v6, 1  ;;  %v1173_v8 = vpop.f32.mrb[9].mxu1 }
 0x2e2   : > { %v841_v0 = vpop.f32.mrb[10].mxu1 }
 0x2e3   : > { %v845_v9 = vsel %vm621_vm3, %v844_v7, 0.0  ;;  %v1174_v10 = vpop.f32.mrb[11].mxu1 }
 0x2e4   : > { %v846_v13 = vadd.f32 %v845_v9, %v786_v5 }
 0x2e6   : > { %v854_v14 = vadd.f32 %v1099_v12, %v846_v13 }
 0x2e8   : > { %v855_v15 = vmax.f32 %v854_v14, 0.0 }
 0x2ea   : > { %v856_v11 = vsel %vm452_vm1, %v855_v15, 0.0  ;;  %v860_v16 = vmul.f32 %v855_v15, %v855_v15 }
 0x2eb   : > { %857 = vadd.xlane.f32.xlu1 %v856_v11 }
 0x2ec   : > { %v861_v17 = vsel %vm452_vm1, %v860_v16, 0.0 }
 0x2ef   : > { %862 = vadd.xlane.f32.xlu1 %v861_v17 }
 0x378   : > { %v858_v18 = vpop.xlane.xlu1 %857 }
 0x379   : > { %v859_v19 = vmul.f32 0.03125, %v858_v18 }
 0x37b   : > { %v865_v21 = vmul.f32 %v859_v19, %v859_v19  ;;  %v867_v25 = vsub.f32 %v855_v15, %v859_v19 }
 0x37c   : > { %v863_v20 = vpop.xlane.xlu1 %862 }
 0x37d   : > { %v864_v22 = vmul.f32 0.03125, %v863_v20 }
 0x37f   : > { %v866_v23 = vsub.f32 %v864_v22, %v865_v21 }
 0x381   : > { %v868_v24 = vadd.f32 1e-05, %v866_v23 }
 0x383   : > { %1265 = vrsqrt.f32 %v868_v24 }
 0x38d   : > { %v1266_v26 = vpop.eup %1265 }
 0x38e   : > { %v870_v28 = vmul.f32 %v1266_v26, %v867_v25 }
 0x390   : > { %v878_v30 = vmul.f32 %v1100_v27, %v870_v28 }
 0x392   : > { %v886_v31 = vadd.f32 %v1101_v29, %v878_v30 }
 0x394   : > { %1176 = vmatpush3.xpose.msk.msra.mxu0 %vm452_vm1, %v886_v31 }
 0x397   : > { %1178 = vmatmul.mubr.msk.f32.vlgmr.msra.gmra.mrb[12].mxu0 %vm452_vm1, %v887_v32 }
 0x46a   : > { %v962_v34 = vpop.f32.mrb[12].mxu0 }
 0x46b   : > { %v963_v35 = vadd.f32 %v962_v34, %v889_v33  ;;  %v1179_v36 = vpop.f32.mrb[13].mxu0 }
 0x46d   : > { %v966_v37 = vmax.f32 %v963_v35, 0.0 }
 0x46f   : > { %968 = vst.msk [vmem:[%s430_s25] sm:$0x1] %vm967_vm4, %v966_v37 }
 0x470   : > { %1366 = shalt.err (!%p1363_p2)
}
 0x471   : > { %s1367_s15 = scalar_lea.hbm %s1756_s13, 16  ;;  %s1371_s19 = scalar_lea.hbm %s1811_s11, 32 }
 0x472   : > { %p1368_p13 = scmp.ne.s32.totalorder %s1756_s13, %s1367_s15  ;;  %p1372_p4 = scmp.lt.u32.totalorder %s1756_s13, %s1811_s11 }
 0x473   : > { %p1373_p5 = scmp.lt.u32.totalorder %s1371_s19, %s1367_s15  ;;  %p1375_p8 = scmp.lt.u32.totalorder %s1367_s15, %s1756_s13 }
 0x474   : > { %p1369_p6 = pnand %p1368_p13, %p1829_p0 }
 0x475   : > { %p1374_p11 = por %p1373_p5, %p1372_p4 }
 0x476   : > { %p1370_p10 = pneg %p1369_p6 }
 0x477   : > { %p1376_p1 = por %p1375_p8, %p1374_p11 }
 0x479   : > { %p1377_p3 = pnand %p1376_p1, %p1370_p10 }
 0x47b   : > { %1380 = shalt.err (!%p1377_p3)
}
 0x47c   : > { %1190 = dma.vmem_to_hbm [thread:$0]  (%p1829_p0), %s1758_s29, 16, %s1756_s13, %s970_s30  }
 0x47d PF: > { %s1830_s23 = sld [smem:[#allocation13_spill]]  ;;  %s1831_s28 = sld [smem:[#allocation14_spill]] }
 0x47e   : > { %p1833_p9 = scmp.ge.s32.totalorder %s1423_s22, 2 }
 0x483   : > { %s994_s10 = sand.u32 1, %s1830_s23   ;;  %p1832_p7 = scmp.ne.s32.totalorder %s1831_s28, 0 }
 0x484   : > { %s995_s18 = scalar_lea.sflag [#allocation5], %s994_s10 }
 0x485   : > { %p1204_p12 = pnand %p1833_p9, %p1832_p7 }
 0x487   : > { %1406 = dma.done.wait (!%p1204_p12), %s995_s18, 16  }
 0x488   : > { %1408 = vsyncadd (!%p1204_p12), %s995_s18, 4294967280  ;;  %p26_p2 = scmp.ge.s32.totalorder %s1606_s14, 4   ;;  %s1834_s19 = smov %s1415_s20 }
 0x489   : > { %s1835_s20 = smov %s1419_s21  ;;  %s1836_s21 = smov %s1622_s17 }
 0x48a   : > { %s1837_s22 = smov %s1606_s14  ;;  %28 = sbr.rel (!%p26_p2) target bundleno = 8 (0x8), region = 121 }
 0x491   :  { %999 = vsyncpa [#allocation4], 1 }
 0x492   :  { %1001 = vsyncpa [#allocation4 + $0x1], 1 }
 0x493   :  { %1002 = vsyncpa [#allocation7], 1 }
 0x494   :  { %1003 = vsyncpa [#allocation5], 1 }
 0x495   :  { %1005 = vsyncpa [#allocation5 + $0x1], 1 }

</bundles_post_ra>
